<compile_context>
chip_gen: v7x
topology: tpu7x:2x2x1
jax: 0.10.0
libtpu: 0.0.40
codegen_flags: <defaults>
</compile_context>

<pallas_src>
import functools

import jax
import jax.numpy as jnp
from jax.experimental import pallas as pl
from jax.experimental.pallas import tpu as pltpu


def _round_up(x, m):
    return ((x + m - 1) // m) * m


def _se_kernel(x_ref, w1_ref, w2_ref, o_ref, *, inv_hw):
    # x_ref: (bt, HWp, Cp) -- spatial on sublanes, channels on lanes.
    x = x_ref[...]                                             # native dtype

    # Squeeze: mean over spatial positions (sublane reduction), f32 accumulate.
    pooled = jnp.sum(x, axis=1, dtype=jnp.float32) * inv_hw    # (bt, Cp)

    # Excite: Linear -> ReLU -> Linear -> sigmoid (batched over the tile).
    h = jnp.dot(pooled, w1_ref[...],
                preferred_element_type=jnp.float32)            # (bt, Hp)
    h = jnp.maximum(h, 0.0)
    gate = jax.nn.sigmoid(
        jnp.dot(h, w2_ref[...], preferred_element_type=jnp.float32))  # (bt, Cp)

    # Scale: broadcast channel gates over the spatial (sublane) axis.
    o_ref[...] = (x * gate[:, None, :].astype(x.dtype)).astype(o_ref.dtype)


def _pick_batch_tile(B, per_elem_bytes, budget_bytes=12 << 20):
    """Largest divisor of B that (a) keeps double-buffered in+out under the
    VMEM budget and (b) leaves >=2 grid points when B>=2 (v7x megacore)."""
    max_bt = max(1, budget_bytes // (4 * per_elem_bytes))
    if B >= 2:
        max_bt = min(max_bt, (B + 1) // 2)
    bt = 1
    for d in range(1, B + 1):
        if B % d == 0 and d <= max_bt:
            bt = d
    return bt


@jax.jit
def se_block_pallas(x, w1_t, w2_t):
    """x: (B, C, H, W) or (C, H, W); w1_t: (C, hidden); w2_t: (hidden, C).

    w1_t / w2_t are the transposed nn.Linear weights (torch stores (out, in)).
    """
    squeeze_later = x.ndim == 3
    if squeeze_later:
        x = x[None]
    B, C, H, W = x.shape
    HW = H * W
    hidden = w1_t.shape[1]

    Cp = _round_up(C, 128)          # lane-dense channels
    HWp = _round_up(HW, 8)          # full sublanes
    Hp = _round_up(hidden, 128)     # lane-dense hidden

    # NCHW -> (B, HW, C), zero-pad to (B, HWp, Cp).  Layout plumbing only.
    x_l = jnp.transpose(x.reshape(B, C, HW), (0, 2, 1))
    x_l = jnp.pad(x_l, ((0, 0), (0, HWp - HW), (0, Cp - C)))
    w1_p = jnp.pad(w1_t, ((0, Cp - C), (0, Hp - hidden)))
    w2_p = jnp.pad(w2_t, ((0, Hp - hidden), (0, Cp - C)))

    bt = _pick_batch_tile(B, HWp * Cp * x.dtype.itemsize)
    grid = (B // bt,)

    kernel = functools.partial(_se_kernel, inv_hw=1.0 / HW)

    out_p = pl.pallas_call(
        kernel,
        out_shape=jax.ShapeDtypeStruct((B, HWp, Cp), x.dtype),
        grid_spec=pltpu.PrefetchScalarGridSpec(
            num_scalar_prefetch=0,
            grid=grid,
            in_specs=[
                pl.BlockSpec((bt, HWp, Cp), lambda i: (i, 0, 0)),
                pl.BlockSpec((Cp, Hp), lambda i: (0, 0)),
                pl.BlockSpec((Hp, Cp), lambda i: (0, 0)),
            ],
            out_specs=pl.BlockSpec((bt, HWp, Cp), lambda i: (i, 0, 0)),
        ),
        compiler_params=pltpu.CompilerParams(
            dimension_semantics=("parallel",)),
    )(x_l, w1_p, w2_p)

    # Strip padding, back to NCHW.
    out = jnp.transpose(out_p[:, :HW, :C], (0, 2, 1)).reshape(B, C, H, W)
    if squeeze_later:
        out = out[0]
    return out


def se_block_reference(x, w1_t, w2_t):
    """Plain-JAX reference matching the PyTorch forward."""
    squeeze_later = x.ndim == 3
    if squeeze_later:
        x = x[None]
    squeezed = jnp.mean(x, axis=(2, 3))                        # (B, C)
    h = jnp.maximum(squeezed @ w1_t, 0.0)                      # (B, hidden)
    e = jax.nn.sigmoid(h @ w2_t)                               # (B, C)
    out = x * e[:, :, None, None]
    if squeeze_later:
        out = out[0]
    return out


if __name__ == "__main__":
    # Module config: num_channels=64, hidden_rate=0.0625 -> hidden_channels=4,
    # use_bias=False (so no bias parameters exist).
    num_channels = 64
    hidden_rate = 0.0625
    hidden_channels = int(num_channels * hidden_rate)  # = 4

    B, C, H, W = 2, num_channels, 8, 8

    key = jax.random.PRNGKey(0)
    kx, k1, k2 = jax.random.split(key, 3)

    x = jax.random.normal(kx, (B, C, H, W), dtype=jnp.float32)

    # torch nn.Linear weight is (out, in); we store the transposed (in, out).
    w1_t = (jax.random.normal(k1, (num_channels, hidden_channels),
                              dtype=jnp.float32) * 0.1)        # (C, hidden)
    w2_t = (jax.random.normal(k2, (hidden_channels, num_channels),
                              dtype=jnp.float32) * 0.1)        # (hidden, C)

    out = se_block_pallas(x, w1_t, w2_t)
    out = jax.block_until_ready(out)

    ref = se_block_reference(x, w1_t, w2_t)
    assert out.shape == (B, C, H, W)
    assert jnp.allclose(out, ref, atol=1e-5, rtol=1e-5), "mismatch vs reference"

    # Also check the 3-D (unbatched) path.
    out3 = jax.block_until_ready(se_block_pallas(x[0], w1_t, w2_t))
    ref3 = se_block_reference(x[0], w1_t, w2_t)
    assert out3.shape == (C, H, W)
    assert jnp.allclose(out3, ref3, atol=1e-5, rtol=1e-5), "mismatch (3D) vs reference"

    print("KERNEL_OK")
</pallas_src>

<mosaic_0001>
module attributes {stable_mosaic.version = 11 : i64} {
  func.func @_se_kernel(%arg0: i32, %arg1: memref<1x64x128xf32, #tpu.memory_space<vmem>>, %arg2: memref<128x128xf32, #tpu.memory_space<vmem>>, %arg3: memref<128x128xf32, #tpu.memory_space<vmem>>, %arg4: memref<1x64x128xf32, #tpu.memory_space<vmem>>) attributes {dimension_semantics = [#tpu.dimension_semantics<parallel>], iteration_bounds = array<i64: 2>, scalar_prefetch = 0 : i64, scratch_operands = 0 : i64, tpu.core_type = #tpu.core_type<tc>, window_params = [{transform_indices = @transform_0, window_bounds = array<i64: 1, 64, 128>}, {pipeline_mode = #tpu.pipeline_mode<synchronous>, transform_indices = @transform_1, window_bounds = array<i64: 128, 128>}, {pipeline_mode = #tpu.pipeline_mode<synchronous>, transform_indices = @transform_2, window_bounds = array<i64: 128, 128>}, {transform_indices = @transform_3, window_bounds = array<i64: 1, 64, 128>}]} {
    %c0 = arith.constant 0 : index
    %c0_0 = arith.constant 0 : index
    %c0_1 = arith.constant 0 : index
    %0 = vector.load %arg1[%c0, %c0_0, %c0_1] : memref<1x64x128xf32, #tpu.memory_space<vmem>>, vector<1x64x128xf32>
    %cst = arith.constant dense<0.000000e+00> : vector<1x128xf32>
    %1 = vector.multi_reduction <add>, %0, %cst [1] : vector<1x64x128xf32> to vector<1x128xf32>
    %cst_2 = arith.constant 1.562500e-02 : f32
    %2 = vector.broadcast %cst_2 : f32 to vector<1x128xf32>
    %3 = arith.mulf %1, %2 : vector<1x128xf32>
    %c0_3 = arith.constant 0 : index
    %c0_4 = arith.constant 0 : index
    %4 = vector.load %arg2[%c0_3, %c0_4] : memref<128x128xf32, #tpu.memory_space<vmem>>, vector<128x128xf32>
    %cst_5 = arith.constant dense<0.000000e+00> : vector<1x128xf32>
    %5 = tpu.matmul %3, %4, %cst_5 {dimension_numbers = #tpu.dot_dimension_numbers<[1], [0], [0], [1], [0, 0, 1, 1], [], []>} : vector<1x128xf32>, vector<128x128xf32>, vector<1x128xf32> -> vector<1x128xf32>
    %cst_6 = arith.constant 0.000000e+00 : f32
    %6 = vector.broadcast %cst_6 : f32 to vector<1x128xf32>
    %7 = arith.maximumf %5, %6 : vector<1x128xf32>
    %c0_7 = arith.constant 0 : index
    %c0_8 = arith.constant 0 : index
    %8 = vector.load %arg3[%c0_7, %c0_8] : memref<128x128xf32, #tpu.memory_space<vmem>>, vector<128x128xf32>
    %cst_9 = arith.constant dense<0.000000e+00> : vector<1x128xf32>
    %9 = tpu.matmul %7, %8, %cst_9 {dimension_numbers = #tpu.dot_dimension_numbers<[1], [0], [0], [1], [0, 0, 1, 1], [], []>} : vector<1x128xf32>, vector<128x128xf32>, vector<1x128xf32> -> vector<1x128xf32>
    %10 = arith.negf %9 : vector<1x128xf32>
    %11 = math.exp %10 : vector<1x128xf32>
    %cst_10 = arith.constant 1.000000e+00 : f32
    %12 = vector.broadcast %cst_10 : f32 to vector<1x128xf32>
    %13 = arith.addf %12, %11 : vector<1x128xf32>
    %14 = arith.divf %12, %13 : vector<1x128xf32>
    %15 = vector.shape_cast %14 : vector<1x128xf32> to vector<1x1x128xf32>
    %16 = vector.broadcast %15 : vector<1x1x128xf32> to vector<1x64x128xf32>
    %17 = arith.mulf %0, %16 : vector<1x64x128xf32>
    %c0_11 = arith.constant 0 : index
    %c0_12 = arith.constant 0 : index
    %c0_13 = arith.constant 0 : index
    %18 = vector.load %arg4[%c0_11, %c0_12, %c0_13] : memref<1x64x128xf32, #tpu.memory_space<vmem>>, vector<1x64x128xf32>
    tpu.vector_store %arg4[%c0_11, %c0_12, %c0_13], %17 {strides = array<i32>} : memref<1x64x128xf32, #tpu.memory_space<vmem>>, vector<1x64x128xf32>,
    return
  }
  func.func @transform_0(%arg0: i32) -> (i32, i32, i32) {
    %c0_i32 = arith.constant 0 : i32
    %c0_i32_0 = arith.constant 0 : i32
    %c0_i32_1 = arith.constant 0 : i32
    return %arg0, %c0_i32, %c0_i32_0 : i32, i32, i32
  }
  func.func @transform_1(%arg0: i32) -> (i32, i32) {
    %c0_i32 = arith.constant 0 : i32
    %c0_i32_0 = arith.constant 0 : i32
    %c0_i32_1 = arith.constant 0 : i32
    return %c0_i32, %c0_i32_0 : i32, i32
  }
  func.func @transform_2(%arg0: i32) -> (i32, i32) {
    %c0_i32 = arith.constant 0 : i32
    %c0_i32_0 = arith.constant 0 : i32
    %c0_i32_1 = arith.constant 0 : i32
    return %c0_i32, %c0_i32_0 : i32, i32
  }
  func.func @transform_3(%arg0: i32) -> (i32, i32, i32) {
    %c0_i32 = arith.constant 0 : i32
    %c0_i32_0 = arith.constant 0 : i32
    %c0_i32_1 = arith.constant 0 : i32
    return %arg0, %c0_i32, %c0_i32_0 : i32, i32, i32
  }
}

</mosaic_0001>

<bundles_post_ra>
// kernel: se_block_pallas.1
= control target key start
LH: loop header
LB: loop body
LE: loop exit
PB: predicated region body
PF: predicated region fallthrough
CT: control target
= control target key end

     0   :  { %s659_s12 = smov 0   ;;  %s837_s0 = inlined_call_operand.vmem [shape: f32[2,64,128], index: 0, kind: input, shape index: {}]   ;;  %s838_s1 = inlined_call_operand.vmem [shape: f32[128,128], index: 1, kind: input, shape index: {}]   ;;  %s839_s2 = inlined_call_operand.vmem [shape: f32[128,128], index: 2, kind: input, shape index: {}]   ;;  %s840_s3 = inlined_call_operand.vmem [shape: f32[2,64,128], index: 3, kind: output, shape index: {}]  }
   0x1 LB: > { %s447_s13 = sadd.s32 4294967295, %s634_s12   ;;  %p451_p0 = scmp.ge.s32.totalorder %s634_s12, 1  ;;  %s634_s12 = sphi %s659_s12, %s13_s12  }
   0x2   : > { %p137_p1 = scmp.lt.s32.totalorder %s634_s12, 3 }
   0x4   : > { %p138_p2 = pnand %p451_p0, %p137_p1 }
   0x5   : > { %v193_v0 = vld [vmem:[%s838_s1] sm:$0xff] (!%p138_p2)  ;;  %v194_v1 = vld [vmem:[%s838_s1 + $0x8] sm:$0xff] (!%p138_p2)  ;;  %v195_v2 = vld [vmem:[%s838_s1 + $0x10] sm:$0xff] (!%p138_p2)  ;;  %v636_v3 = vmov (!%p138_p2), 0.0|0.0   ;;  %vm637_vm0 = vmmov (!%p138_p2), 0   ;;  %v638_v6 = vmov (!%p138_p2), 0.0  }
   0x6   : > { %141 = sbr.rel (%p138_p2) target bundleno = 505 (0x1f9), region = 32  ;;  %565 = vmatprep.subr.bf16.mxu0 (!%p138_p2), %v636_v3  ;;  %v566_v4 = vpack.c.bf16 (!%p138_p2), %v194_v1, %v193_v0  ;;  %v196_v5 = vld [vmem:[%s838_s1 + $0x18] sm:$0xff] (!%p138_p2)  ;;  %527 = vmatprep.mubr.msk.f32.mxu0 (!%p138_p2), %vm637_vm0, %v638_v6  ;;  %p161_p3 = scmp.lt.s32.totalorder (!%p138_p2), %s447_s13, 1  ;;  %v197_v8 = vld [vmem:[%s838_s1 + $0x20] sm:$0xff] (!%p138_p2)  ;;  %v198_v9 = vld [vmem:[%s838_s1 + $0x28] sm:$0xff] (!%p138_p2) }
   0x7   : > { %589 = vmatprep.subr.bf16.mxu1 (!%p138_p2), %v636_v3  ;;  %562 = vmatprep.mubr.msk.f32.mxu1 (!%p138_p2), %vm637_vm0, %v638_v6  ;;  %v569_v7 = vpack.c.bf16 (!%p138_p2), %v196_v5, %v195_v2  ;;  %v280_v10 = vld [vmem:[%s839_s2] sm:$0xff] (!%p138_p2)  ;;  %v281_v11 = vld [vmem:[%s839_s2 + $0x8] sm:$0xff] (!%p138_p2)  ;;  %v282_v13 = vld [vmem:[%s839_s2 + $0x10] sm:$0xff] (!%p138_p2)  ;;  %v572_v15 = vpack.c.bf16 (!%p138_p2), %v198_v9, %v197_v8 }
   0x8   : > { %567 = vmatpush3.bf16.msra.mxu0 (!%p138_p2), %v566_v4  ;;  %v590_v12 = vpack.c.bf16 (!%p138_p2), %v281_v11, %v280_v10  ;;  %v283_v14 = vld [vmem:[%s839_s2 + $0x18] sm:$0xff] (!%p138_p2)  ;;  %v199_v19 = vld [vmem:[%s838_s1 + $0x30] sm:$0xff] (!%p138_p2)  ;;  %v284_v24 = vld [vmem:[%s839_s2 + $0x20] sm:$0xff] (!%p138_p2) }
   0x9   : > { %568 = vmatprep.subr.bf16.mxu0 (!%p138_p2), %v636_v3  ;;  %v200_v20 = vld [vmem:[%s838_s1 + $0x38] sm:$0xff] (!%p138_p2)  ;;  %v593_v22 = vpack.c.bf16 (!%p138_p2), %v283_v14, %v282_v13  ;;  %v285_v25 = vld [vmem:[%s839_s2 + $0x28] sm:$0xff] (!%p138_p2)  ;;  %v201_v29 = vld [vmem:[%s838_s1 + $0x40] sm:$0xff] (!%p138_p2) }
   0xa   : > { %591 = vmatpush3.bf16.msra.mxu1 (!%p138_p2), %v590_v12  ;;  %v575_v27 = vpack.c.bf16 (!%p138_p2), %v200_v20, %v199_v19  ;;  %v202_v30 = vld [vmem:[%s838_s1 + $0x48] sm:$0xff] (!%p138_p2)  ;;  %v596_v32 = vpack.c.bf16 (!%p138_p2), %v285_v25, %v284_v24  ;;  %v286_v34 = vld [vmem:[%s839_s2 + $0x30] sm:$0xff] (!%p138_p2)  ;;  %v287_v35 = vld [vmem:[%s839_s2 + $0x38] sm:$0xff] (!%p138_p2)  ;;  %v372_v19 = vlaneseq (!%p138_p2) }
   0xb   : > { %592 = vmatprep.subr.bf16.mxu1 (!%p138_p2), %v636_v3  ;;  %v578_v37 = vpack.c.bf16 (!%p138_p2), %v202_v30, %v201_v29  ;;  %v203_v39 = vld [vmem:[%s838_s1 + $0x50] sm:$0xff] (!%p138_p2)  ;;  %v204_v40 = vld [vmem:[%s838_s1 + $0x58] sm:$0xff] (!%p138_p2)  ;;  %v599_v42 = vpack.c.bf16 (!%p138_p2), %v287_v35, %v286_v34  ;;  %v288_v44 = vld [vmem:[%s839_s2 + $0x40] sm:$0xff] (!%p138_p2) }
   0xc   : > { %570 = vmatpush3.bf16.msra.mxu0 (!%p138_p2), %v569_v7  ;;  %v289_v45 = vld [vmem:[%s839_s2 + $0x48] sm:$0xff] (!%p138_p2)  ;;  %v581_v47 = vpack.c.bf16 (!%p138_p2), %v204_v40, %v203_v39  ;;  %v205_v48 = vld [vmem:[%s838_s1 + $0x60] sm:$0xff] (!%p138_p2)  ;;  %v290_v52 = vld [vmem:[%s839_s2 + $0x50] sm:$0xff] (!%p138_p2)  ;;  %v373_v20 = vshrl.u32 (!%p138_p2), %v372_v19, 7 }
   0xd   : > { %s842_s13 = smov (!%p161_p3, %s447_s13), 1  ;;  %571 = vmatprep.subr.bf16.mxu0 %v636_v3  ;;  %v206_v49 = vld [vmem:[%s838_s1 + $0x68] sm:$0xff]  ;;  %v602_v51 = vpack.c.bf16 %v289_v45, %v288_v44  ;;  %v291_v53 = vld [vmem:[%s839_s2 + $0x58] sm:$0xff]  ;;  %v207_v56 = vld [vmem:[%s838_s1 + $0x70] sm:$0xff] }
   0xe   : > { %s459_s26 = sshll.u32 %s842_s13, 6  ;;  %594 = vmatpush3.bf16.msra.mxu1 %v593_v22  ;;  %v584_v55 = vpack.c.bf16 %v206_v49, %v205_v48  ;;  %v208_v57 = vld [vmem:[%s838_s1 + $0x78] sm:$0xff]  ;;  %v605_v59 = vpack.c.bf16 %v291_v53, %v290_v52  ;;  %v292_v60 = vld [vmem:[%s839_s2 + $0x60] sm:$0xff]  ;;  %v293_v61 = vld [vmem:[%s839_s2 + $0x68] sm:$0xff] }
   0xf   : > { %s702_s6 = scalar_lea.vmem %s837_s0, %s459_s26  ;;  %595 = vmatprep.subr.bf16.mxu1 %v636_v3  ;;  %v587_v63 = vpack.c.bf16 %v208_v57, %v207_v56  ;;  %v608_v1 = vpack.c.bf16 %v293_v61, %v292_v60  ;;  %v294_v6 = vld [vmem:[%s839_s2 + $0x70] sm:$0xff]  ;;  %v295_v7 = vld [vmem:[%s839_s2 + $0x78] sm:$0xff]  ;;  %s170_s10 = scalar_lea.vmem %s840_s3, %s459_s26 }
  0x10   : > { %v711_v16 = vld [vmem:[%s702_s6] sm:$0xff]  ;;  %v714_v17 = vld [vmem:[%s702_s6 + $0x8] sm:$0xff]  ;;  %v717_v18 = vld [vmem:[%s702_s6 + $0x10] sm:$0xff]  ;;  %573 = vmatpush3.bf16.msra.mxu0 %v572_v15  ;;  %v611_v8 = vpack.c.bf16 %v295_v7, %v294_v6 }
  0x11   : > { %v179_v21 = vadd.f32 %v714_v17, %v711_v16  ;;  %v729_v23 = vld [vmem:[%s702_s6 + $0x18] sm:$0xff]  ;;  %v740_v28 = vld [vmem:[%s702_s6 + $0x20] sm:$0xff]  ;;  %574 = vmatprep.subr.bf16.mxu0 %v636_v3  ;;  %v751_v33 = vld [vmem:[%s702_s6 + $0x28] sm:$0xff] }
  0x12   : > { %v762_v38 = vld [vmem:[%s702_s6 + $0x30] sm:$0xff]  ;;  %597 = vmatpush3.bf16.msra.mxu1 %v596_v32  ;;  %v773_v43 = vld [vmem:[%s702_s6 + $0x38] sm:$0xff] }
  0x13   : > { %v180_v26 = vadd.f32 %v179_v21, %v717_v18  ;;  %598 = vmatprep.subr.bf16.mxu1 %v636_v3  ;;  %v374_v21 = vsub.s32 0, %v373_v20 }
  0x14   : > { %576 = vmatpush3.bf16.msra.mxu0 %v575_v27 }
  0x15   : > { %v181_v31 = vadd.f32 %v180_v26, %v729_v23  ;;  %577 = vmatprep.subr.bf16.mxu0 %v636_v3 }
  0x16   : > { %600 = vmatpush3.bf16.msra.mxu1 %v599_v42 }
  0x17   : > { %v182_v36 = vadd.f32 %v181_v31, %v740_v28  ;;  %601 = vmatprep.subr.bf16.mxu1 %v636_v3 }
  0x18   : > { %579 = vmatpush3.bf16.msra.mxu0 %v578_v37 }
  0x19   : > { %v183_v41 = vadd.f32 %v182_v36, %v751_v33  ;;  %580 = vmatprep.subr.bf16.mxu0 %v636_v3 }
  0x1a   : > { %603 = vmatpush3.bf16.msra.mxu1 %v602_v51 }
  0x1b   : > { %v184_v46 = vadd.f32 %v183_v41, %v762_v38  ;;  %604 = vmatprep.subr.bf16.mxu1 %v636_v3 }
  0x1c   : > { %582 = vmatpush3.bf16.msra.mxu0 %v581_v47 }
  0x1d   : > { %v185_v50 = vadd.f32 %v184_v46, %v773_v43  ;;  %583 = vmatprep.subr.bf16.mxu0 %v636_v3 }
  0x1e   : > { %606 = vmatpush3.bf16.msra.mxu1 %v605_v59 }
  0x1f   : > { %v186_v54 = vrot.slane %v185_v50, 4  ;;  %607 = vmatprep.subr.bf16.mxu1 %v636_v3 }
  0x20   : > { %585 = vmatpush3.bf16.msra.mxu0 %v584_v55 }
  0x21   : > { %v187_v58 = vadd.f32 %v186_v54, %v185_v50  ;;  %586 = vmatprep.subr.bf16.mxu0 %v636_v3 }
  0x22   : > { %609 = vmatpush3.bf16.msra.mxu1 %v608_v1 }
  0x23   : > { %v188_v62 = vrot.slane %v187_v58, 2  ;;  %610 = vmatprep.subr.bf16.mxu1 %v636_v3 }
  0x24   : > { %588 = vmatpush3.bf16.msra.mxu0 %v587_v63 }
  0x25   : > { %v189_v0 = vadd.f32 %v188_v62, %v187_v58 }
  0x26   : > { %612 = vmatpush3.bf16.msra.mxu1 %v611_v8 }
  0x27   : > { %v190_v2 = vrot.slane %v189_v0, 1 }
  0x29   : > { %v191_v4 = vadd.f32 %v190_v2, %v189_v0 }
  0x2b   : > { %v192_v5 = vmul.f32 0.015625, %v191_v4 }
  0x2d   : > { %528 = vmatmul.mubr.f32.vlgmr.msra.gmra.mrb[0].mxu0 %v192_v5 }
 0x100   : > { %v275_v9 = vpop.f32.mrb[0].mxu0 }
 0x101   : > { %v279_v10 = vmax.f32 %v275_v9, 0.0  ;;  %v529_v11 = vpop.f32.mrb[1].mxu0 }
 0x103   : > { %563 = vmatmul.mubr.f32.vlgmr.msra.gmra.mrb[0].mxu1 %v279_v10 }
 0x1d6   : > { %v362_v12 = vpop.f32.mrb[0].mxu1 }
 0x1d7   : > { %v456_v13 = vmul.f32 -1.442695, %v362_v12  ;;  %v564_v3 = vpop.f32.mrb[1].mxu1 }
 0x1d9   : > { %624 = vpow2.f32 %v456_v13 }
 0x1e3   : > { %v625_v14 = vpop.eup %624 }
 0x1e4   : > { %v369_v15 = vadd.f32 1.0, %v625_v14 }
 0x1e6   : > { %626 = vrcp.f32 %v369_v15 }
 0x1f0   : > { %v627_v22 = vpop.eup %626 }
 0x1f1   : > { %v375_v24 = vrot.slane %v627_v22, %v374_v21 }
 0x1f3   : > { %v376_v25 = vmul.f32 %v375_v24, %v711_v16  ;;  %v377_v26 = vmul.f32 %v375_v24, %v714_v17  ;;  %v378_v27 = vmul.f32 %v375_v24, %v717_v18  ;;  %v379_v29 = vmul.f32 %v375_v24, %v729_v23 }
 0x1f4   : > { %v380_v30 = vmul.f32 %v375_v24, %v740_v28  ;;  %v381_v31 = vmul.f32 %v375_v24, %v751_v33  ;;  %v382_v32 = vmul.f32 %v375_v24, %v762_v38  ;;  %v383_v34 = vmul.f32 %v375_v24, %v773_v43 }
 0x1f5   : > { %384 = vst [vmem:[%s170_s10] sm:$0xff] %v376_v25  ;;  %385 = vst [vmem:[%s170_s10 + $0x8] sm:$0xff] %v377_v26 }
 0x1f6   : > { %386 = vst [vmem:[%s170_s10 + $0x10] sm:$0xff] %v378_v27  ;;  %387 = vst [vmem:[%s170_s10 + $0x18] sm:$0xff] %v379_v29 }
 0x1f7   : > { %388 = vst [vmem:[%s170_s10 + $0x20] sm:$0xff] %v380_v30  ;;  %389 = vst [vmem:[%s170_s10 + $0x28] sm:$0xff] %v381_v31 }
 0x1f8   : > { %390 = vst [vmem:[%s170_s10 + $0x30] sm:$0xff] %v382_v32  ;;  %391 = vst [vmem:[%s170_s10 + $0x38] sm:$0xff] %v383_v34 }
 0x1f9 PF: > { %s13_s12 = sadd.s32 1, %s634_s12  }
 0x1fa   : > { %p10_p4 = scmp.ge.s32.totalorder %s13_s12, 4  }
 0x1fc   :  { %12 = sbr.rel (!%p10_p4) target bundleno = 1 (0x1), region = 62 }

</bundles_post_ra>
